<compile_context>
chip_gen: v6e
topology: v6e:2x2x1
jax: 0.10.0
libtpu: 0.0.40
codegen_flags: <defaults>
</compile_context>

<pallas_src>
import functools
import math

import jax
import jax.numpy as jnp
from jax.experimental import pallas as pl
from jax.experimental.pallas import tpu as pltpu

F32 = jnp.float32
BF16 = jnp.bfloat16
HIGH = jax.lax.Precision.HIGHEST

# VMEM budget: > 16/32 MiB scoped defaults (v5e/v6e), < 64 MiB physical (v7x per-TC).
_VMEM_LIMIT_BYTES = 48 * 1024 * 1024


# --------------------------- Pallas kernels ---------------------------------

def _mha_addnorm_kernel(*refs, num_heads, mask_mode, kv_is_x, kv_offset,
                        q_tile, eps):
    """One grid step = one (batch row, query tile): QKV -> attention -> W_o -> AddNorm."""
    idx = 0
    if mask_mode == "lens":
        vl_ref = refs[idx]; idx += 1
    else:
        vl_ref = None
    x_ref = refs[idx]; idx += 1
    if kv_is_x:
        kv_ref = x_ref
    else:
        kv_ref = refs[idx]; idx += 1
    (wq_ref, wk_ref, wv_ref, wo_ref, g_ref, bt_ref, o_ref, attn_sc) = refs[idx:]

    # Current query tile (and K/V source).
    if kv_is_x:
        kv = x_ref[0]                                    # (Tkv, H) -- full sequence block
        if q_tile == x_ref.shape[1]:
            x = kv
        else:
            q_start = pl.multiple_of(pl.program_id(1) * q_tile, q_tile)
            x = x_ref[0, pl.ds(q_start, q_tile), :]      # query slice of the resident block
    else:
        x = x_ref[0]                                     # (q_tile, H)
        kv = kv_ref[0]                                   # (Tk, H)

    tq, h_dim = x.shape
    tk = kv.shape[0]
    dh = h_dim // num_heads

    xb = x.astype(BF16)
    kvb = kv.astype(BF16)

    # Projections (bias=False as in d2l); 1/sqrt(dh) already folded into W_q.
    # Cast q/k/v to bf16 ONCE so all score / P@V matmuls feed the MXU bf16 operands.
    q = jnp.dot(xb, wq_ref[...], preferred_element_type=F32).astype(BF16)    # (tq, H)
    k = jnp.dot(kvb, wk_ref[...], preferred_element_type=F32).astype(BF16)   # (tk, H)
    v = jnp.dot(kvb, wv_ref[...], preferred_element_type=F32).astype(BF16)   # (tk, H)

    if mask_mode == "causal":
        q_start_idx = pl.program_id(1) * q_tile
        qi = jax.lax.broadcasted_iota(jnp.int32, (tq, tk), 0) + q_start_idx
        ki = jax.lax.broadcasted_iota(jnp.int32, (tq, tk), 1)
        keep = ki <= qi + kv_offset            # offset = 0 when the KV cache is empty
    elif mask_mode == "lens":
        ki = jax.lax.broadcasted_iota(jnp.int32, (tq, tk), 1)
        keep = ki < vl_ref[pl.program_id(0)]
    else:  # 'none' -> unmasked, no SMEM read, no where()
        keep = None

    # Per-head attention; each head result goes straight into the (tq, H) VMEM scratch slice
    # (no live heads-list, no lane concat).  Softmax stats stay f32.
    for hh in range(num_heads):                # static unrolled loop over heads
        lo = hh * dh
        s = jnp.dot(q[:, lo:lo + dh], k[:, lo:lo + dh].T,
                    preferred_element_type=F32)               # (tq, tk) f32
        if keep is not None:
            s = jnp.where(keep, s, -1e6)                      # d2l masked_softmax convention
        s = s - jnp.max(s, axis=-1, keepdims=True)
        p = jnp.exp(s)
        p = p * pl.reciprocal(jnp.sum(p, axis=-1, keepdims=True), approx=True)
        attn_sc[:, lo:lo + dh] = jnp.dot(
            p.astype(BF16), v[:, lo:lo + dh],
            preferred_element_type=F32).astype(BF16)

    # Single lane-dense output projection with K = H (good MXU utilization).
    proj = jnp.dot(attn_sc[...], wo_ref[...], preferred_element_type=F32)

    # AddNorm: LayerNorm(dropout(proj) + x) with dropout p = 0; stats in f32.
    z = x.astype(F32) + proj
    mean = jnp.mean(z, axis=-1, keepdims=True)
    zc = z - mean
    var = jnp.mean(zc * zc, axis=-1, keepdims=True)
    o_ref[0] = (zc * jax.lax.rsqrt(var + eps) * g_ref[...] + bt_ref[...]
                ).astype(o_ref.dtype)


def _ffn_addnorm_kernel(x_ref, w1_ref, b1_ref, w2_ref, b2_ref, g_ref, bt_ref,
                        o_ref, *, eps):
    """Row-tile fused PositionWiseFFN + AddNorm3 (ragged tail rows masked on store)."""
    x = x_ref[...]                                              # (tm, H)
    h = jnp.dot(x.astype(BF16), w1_ref[...], preferred_element_type=F32) + b1_ref[...]
    h = jnp.maximum(h, 0.0)
    y = jnp.dot(h.astype(BF16), w2_ref[...], preferred_element_type=F32) + b2_ref[...]
    z = x.astype(F32) + y
    mean = jnp.mean(z, axis=-1, keepdims=True)
    zc = z - mean
    var = jnp.mean(zc * zc, axis=-1, keepdims=True)
    o_ref[...] = (zc * jax.lax.rsqrt(var + eps) * g_ref[...] + bt_ref[...]
                  ).astype(o_ref.dtype)


# --------------------------- wrappers ----------------------------------------

def _pick_q_tile(n, cap=256):
    """Largest query tile <= cap that divides n (multiple of 8 unless it equals n)."""
    if n <= cap:
        return n
    best = None
    for t in range(8, cap + 1, 8):
        if n % t == 0:
            best = t
    return best if best is not None else n


def prepare_decoder_block_params(params, num_heads):
    """One-time weight prep: fold 1/sqrt(dh) into W_q, cast weights to bf16, reshape biases."""
    def prep_attn(p_attn, p_ln):
        h = p_attn["w_q"].shape[0]
        dh = h // num_heads
        scale = 1.0 / math.sqrt(dh)
        return {
            "wq": (p_attn["w_q"] * scale).astype(BF16),
            "wk": p_attn["w_k"].astype(BF16),
            "wv": p_attn["w_v"].astype(BF16),
            "wo": p_attn["w_o"].astype(BF16),
            "gamma": p_ln["gamma"].reshape(1, h).astype(F32),
            "beta": p_ln["beta"].reshape(1, h).astype(F32),
        }

    h = params["ffn"]["w1"].shape[0]
    f = params["ffn"]["w1"].shape[1]
    return {
        "attention1": prep_attn(params["attention1"], params["addnorm1"]),
        "attention2": prep_attn(params["attention2"], params["addnorm2"]),
        "ffn": {
            "w1": params["ffn"]["w1"].astype(BF16),
            "b1": params["ffn"]["b1"].reshape(1, f).astype(F32),
            "w2": params["ffn"]["w2"].astype(BF16),
            "b2": params["ffn"]["b2"].reshape(1, h).astype(F32),
            "gamma": params["addnorm3"]["gamma"].reshape(1, h).astype(F32),
            "beta": params["addnorm3"]["beta"].reshape(1, h).astype(F32),
        },
    }


def fused_mha_addnorm(prep, x, kv, num_heads, mask_mode, lens=None,
                      kv_is_x=False, eps=1e-5, max_q_tile=256):
    """mask_mode: 'causal' (dec_valid_lens = 1..T), 'lens' (per-batch lens), 'none'.
    kv_is_x: reuse the single x block for Q/K/V (empty KV cache path)."""
    b, tq, h = x.shape
    tk = tq if kv_is_x else kv.shape[1]
    q_tile = _pick_q_tile(tq, max_q_tile)
    n_qt = tq // q_tile

    kernel = functools.partial(
        _mha_addnorm_kernel, num_heads=num_heads, mask_mode=mask_mode,
        kv_is_x=kv_is_x, kv_offset=tk - tq, q_tile=q_tile, eps=eps)

    # TODO(synk): on v7x single-buffer these constant-index weight specs (pl.Buffered(1)).
    w_spec = pl.BlockSpec((h, h), lambda bi, qi: (0, 0))
    vec_spec = pl.BlockSpec((1, h), lambda bi, qi: (0, 0))
    out_spec = pl.BlockSpec((1, q_tile, h), lambda bi, qi: (bi, qi, 0))

    if kv_is_x:
        # One (1, Tq, H) block per batch row; its block index ignores qi so it is fetched once.
        x_spec = pl.BlockSpec((1, tq, h), lambda bi, qi: (bi, 0, 0))
        in_specs = [x_spec, w_spec, w_spec, w_spec, w_spec, vec_spec, vec_spec]
        args = [x, prep["wq"], prep["wk"], prep["wv"], prep["wo"],
                prep["gamma"], prep["beta"]]
    else:
        x_spec = pl.BlockSpec((1, q_tile, h), lambda bi, qi: (bi, qi, 0))
        kv_spec = pl.BlockSpec((1, tk, h), lambda bi, qi: (bi, 0, 0))
        in_specs = [x_spec, kv_spec, w_spec, w_spec, w_spec, w_spec, vec_spec, vec_spec]
        args = [x, kv, prep["wq"], prep["wk"], prep["wv"], prep["wo"],
                prep["gamma"], prep["beta"]]

    if mask_mode == "lens":
        in_specs = [pl.BlockSpec(memory_space=pltpu.MemorySpace.SMEM)] + in_specs
        args = [lens.astype(jnp.int32)] + args

    return pl.pallas_call(
        kernel,
        grid=(b, n_qt),
        in_specs=in_specs,
        out_specs=out_spec,
        out_shape=jax.ShapeDtypeStruct((b, tq, h), F32),
        scratch_shapes=[pltpu.VMEM((q_tile, h), BF16)],   # per-head output accumulator
        compiler_params=pltpu.CompilerParams(
            dimension_semantics=("parallel", "parallel"),
            vmem_limit_bytes=_VMEM_LIMIT_BYTES),
    )(*args)


def fused_ffn_addnorm(p_ffn, x, eps=1e-5, tile_m=512):
    b, t, h = x.shape
    m = b * t
    f = p_ffn["w1"].shape[1]
    x2 = x.reshape(m, h)
    tm = m if m <= tile_m else tile_m
    grid = (pl.cdiv(m, tm),)

    out = pl.pallas_call(
        functools.partial(_ffn_addnorm_kernel, eps=eps),
        grid=grid,
        in_specs=[pl.BlockSpec((tm, h), lambda i: (i, 0)),
                  pl.BlockSpec((h, f), lambda i: (0, 0)),
                  pl.BlockSpec((1, f), lambda i: (0, 0)),
                  pl.BlockSpec((f, h), lambda i: (0, 0)),
                  pl.BlockSpec((1, h), lambda i: (0, 0)),
                  pl.BlockSpec((1, h), lambda i: (0, 0)),
                  pl.BlockSpec((1, h), lambda i: (0, 0))],
        out_specs=pl.BlockSpec((tm, h), lambda i: (i, 0)),
        out_shape=jax.ShapeDtypeStruct((m, h), F32),
        compiler_params=pltpu.CompilerParams(
            dimension_semantics=("parallel",),
            vmem_limit_bytes=_VMEM_LIMIT_BYTES),
    )(x2, p_ffn["w1"], p_ffn["b1"], p_ffn["w2"], p_ffn["b2"],
      p_ffn["gamma"], p_ffn["beta"])
    return out.reshape(b, t, h)


def decoder_block_forward(prep, X, state, *, num_heads, block_i=0, training=True):
    enc_outputs, enc_valid_lens, kv_cache = state
    if kv_cache[block_i] is None:
        key_values = X
        kv_is_x = True
    else:
        # TODO(synk): preallocate cache + input_output_aliases for in-place decode writeback.
        key_values = jnp.concatenate([kv_cache[block_i], X], axis=1)
        kv_is_x = False
    kv_cache = list(kv_cache)
    kv_cache[block_i] = key_values

    self_mode = "causal" if training else "none"
    y = fused_mha_addnorm(
        prep["attention1"], X,
        None if kv_is_x else key_values.astype(BF16),   # kv only feeds bf16 matmuls
        num_heads, self_mode, kv_is_x=kv_is_x)

    cross_mode = "lens" if enc_valid_lens is not None else "none"
    z = fused_mha_addnorm(
        prep["attention2"], y, enc_outputs.astype(BF16),  # halve cross-attn KV stream
        num_heads, cross_mode, enc_valid_lens)

    out = fused_ffn_addnorm(prep["ffn"], z)
    return out, (enc_outputs, enc_valid_lens, kv_cache)


# --------------------------- pure-JAX reference ------------------------------

def _split_heads(x, num_heads):
    b, t, h = x.shape
    dh = h // num_heads
    return x.reshape(b, t, num_heads, dh).transpose(0, 2, 1, 3).reshape(
        b * num_heads, t, dh)


def _merge_heads(x, num_heads):
    bh, t, dh = x.shape
    b = bh // num_heads
    return x.reshape(b, num_heads, t, dh).transpose(0, 2, 1, 3).reshape(
        b, t, num_heads * dh)


def _ref_mha(p, queries, keys, values, num_heads, mode, lens=None):
    b, tq, h = queries.shape
    tk = keys.shape[1]
    dh = h // num_heads
    proj = lambda x, w: jnp.einsum("bth,hd->btd", x, w, precision=HIGH)
    q = _split_heads(proj(queries, p["w_q"]), num_heads)
    k = _split_heads(proj(keys, p["w_k"]), num_heads)
    v = _split_heads(proj(values, p["w_v"]), num_heads)
    s = jnp.einsum("bqd,bkd->bqk", q, k, precision=HIGH) / math.sqrt(dh)
    if mode == "causal":
        mask = jnp.arange(tk)[None, :] <= (jnp.arange(tq)[:, None] + (tk - tq))
        s = jnp.where(mask[None], s, -1e6)
    elif mode == "lens":
        vl = jnp.repeat(lens.astype(jnp.int32), num_heads, axis=0)
        mask = jnp.arange(tk)[None, None, :] < vl[:, None, None]
        s = jnp.where(mask, s, -1e6)
    a = jax.nn.softmax(s, axis=-1)
    o = _merge_heads(jnp.einsum("bqk,bkd->bqd", a, v, precision=HIGH), num_heads)
    return jnp.einsum("bth,hd->btd", o, p["w_o"], precision=HIGH)


def _ref_addnorm(p, x, y, eps=1e-5):
    z = x + y
    mean = z.mean(-1, keepdims=True)
    var = ((z - mean) ** 2).mean(-1, keepdims=True)
    return (z - mean) / jnp.sqrt(var + eps) * p["gamma"] + p["beta"]


def _ref_ffn(p, x):
    h = jnp.einsum("bth,hd->btd", x, p["w1"], precision=HIGH) + p["b1"]
    h = jnp.maximum(h, 0.0)
    return jnp.einsum("btf,fd->btd", h, p["w2"], precision=HIGH) + p["b2"]


def ref_decoder_block(params, X, state, num_heads):
    enc_outputs, enc_valid_lens, kv_cache = state
    key_values = X if kv_cache[0] is None else jnp.concatenate(
        [kv_cache[0], X], axis=1)
    x2 = _ref_mha(params["attention1"], X, key_values, key_values, num_heads,
                  "causal")
    y = _ref_addnorm(params["addnorm1"], X, x2)
    y2 = _ref_mha(params["attention2"], y, enc_outputs, enc_outputs, num_heads,
                  "lens", enc_valid_lens)
    z = _ref_addnorm(params["addnorm2"], y, y2)
    return _ref_addnorm(params["addnorm3"], z, _ref_ffn(params["ffn"], z))


# --------------------------- params & main ------------------------------------

def init_params(key, num_hiddens, ffn_num_hiddens):
    ks = jax.random.split(key, 10)
    lin = lambda k, fi, fo: (jax.random.normal(k, (fi, fo), F32) * 0.05)
    H, F = num_hiddens, ffn_num_hiddens
    attn = lambda k: dict(zip(
        ("w_q", "w_k", "w_v", "w_o"),
        [lin(kk, H, H) for kk in jax.random.split(k, 4)]))
    ln = lambda: {"gamma": jnp.ones((H,), F32), "beta": jnp.zeros((H,), F32)}
    return {
        "attention1": attn(ks[0]),
        "attention2": attn(ks[1]),
        "addnorm1": ln(), "addnorm2": ln(), "addnorm3": ln(),
        "ffn": {"w1": lin(ks[2], H, F), "b1": jnp.zeros((F,), F32),
                "w2": lin(ks[3], F, H), "b2": jnp.zeros((H,), F32)},
    }


if __name__ == "__main__":
    # Note: lane-dense H (multiple of 128) is preferred for real workloads; the toy H=32
    # follows the module's small-shape spec.
    B, T, S, H, NUM_HEADS, FFN_HID = 2, 8, 8, 32, 4, 64

    key = jax.random.PRNGKey(0)
    k_p, k_x, k_e = jax.random.split(key, 3)
    params = init_params(k_p, H, FFN_HID)
    prep = prepare_decoder_block_params(params, NUM_HEADS)   # one-time weight prep

    X = jax.random.normal(k_x, (B, T, H), F32)
    enc_outputs = jax.random.normal(k_e, (B, S, H), F32)
    enc_valid_lens = jnp.array([5, 8], dtype=jnp.int32)
    state = (enc_outputs, enc_valid_lens, [None])   # state[2][i] is None

    out, new_state = decoder_block_forward(prep, X, state,
                                           num_heads=NUM_HEADS, block_i=0,
                                           training=True)
    out = jax.block_until_ready(out)

    ref = ref_decoder_block(params, X, state, NUM_HEADS)
    assert out.shape == (B, T, H)
    assert new_state[2][0].shape == (B, T, H)
    err = float(jnp.max(jnp.abs(out - ref)))
    assert err < 2e-2, err

    print("KERNEL_OK")
</pallas_src>

<mosaic_0001>
module attributes {stable_mosaic.version = 11 : i64} {
  func.func @_mha_addnorm_kernel(%arg0: i32, %arg1: i32, %arg2: memref<1x8x32xf32, #tpu.memory_space<vmem>>, %arg3: memref<32x32xbf16, #tpu.memory_space<vmem>>, %arg4: memref<32x32xbf16, #tpu.memory_space<vmem>>, %arg5: memref<32x32xbf16, #tpu.memory_space<vmem>>, %arg6: memref<32x32xbf16, #tpu.memory_space<vmem>>, %arg7: memref<1x32xf32, #tpu.memory_space<vmem>>, %arg8: memref<1x32xf32, #tpu.memory_space<vmem>>, %arg9: memref<1x8x32xf32, #tpu.memory_space<vmem>>, %arg10: memref<8x32xbf16, #tpu.memory_space<vmem>>) attributes {dimension_semantics = [#tpu.dimension_semantics<parallel>, #tpu.dimension_semantics<parallel>], iteration_bounds = array<i64: 2, 1>, scalar_prefetch = 0 : i64, scratch_operands = 1 : i64, tpu.core_type = #tpu.core_type<tc>, window_params = [{transform_indices = @transform_0, window_bounds = array<i64: 1, 8, 32>}, {pipeline_mode = #tpu.pipeline_mode<synchronous>, transform_indices = @transform_1, window_bounds = array<i64: 32, 32>}, {pipeline_mode = #tpu.pipeline_mode<synchronous>, transform_indices = @transform_2, window_bounds = array<i64: 32, 32>}, {pipeline_mode = #tpu.pipeline_mode<synchronous>, transform_indices = @transform_3, window_bounds = array<i64: 32, 32>}, {pipeline_mode = #tpu.pipeline_mode<synchronous>, transform_indices = @transform_4, window_bounds = array<i64: 32, 32>}, {pipeline_mode = #tpu.pipeline_mode<synchronous>, transform_indices = @transform_5, window_bounds = array<i64: 1, 32>}, {pipeline_mode = #tpu.pipeline_mode<synchronous>, transform_indices = @transform_6, window_bounds = array<i64: 1, 32>}, {transform_indices = @transform_7, window_bounds = array<i64: 1, 8, 32>}]} {
    %c0 = arith.constant 0 : index
    %c0_0 = arith.constant 0 : index
    %c0_1 = arith.constant 0 : index
    %0 = vector.load %arg2[%c0, %c0_0, %c0_1] : memref<1x8x32xf32, #tpu.memory_space<vmem>>, vector<1x8x32xf32>
    %1 = vector.shape_cast %0 : vector<1x8x32xf32> to vector<8x32xf32>
    %2 = arith.truncf %1 : vector<8x32xf32> to vector<8x32xbf16>
    %3 = arith.truncf %1 : vector<8x32xf32> to vector<8x32xbf16>
    %c0_2 = arith.constant 0 : index
    %c0_3 = arith.constant 0 : index
    %4 = vector.load %arg3[%c0_2, %c0_3] : memref<32x32xbf16, #tpu.memory_space<vmem>>, vector<32x32xbf16>
    %cst = arith.constant dense<0.000000e+00> : vector<8x32xf32>
    %5 = tpu.matmul %2, %4, %cst {dimension_numbers = #tpu.dot_dimension_numbers<[1], [0], [0], [1], [0, 0, 1, 1], [], []>} : vector<8x32xbf16>, vector<32x32xbf16>, vector<8x32xf32> -> vector<8x32xf32>
    %6 = arith.truncf %5 : vector<8x32xf32> to vector<8x32xbf16>
    %c0_4 = arith.constant 0 : index
    %c0_5 = arith.constant 0 : index
    %7 = vector.load %arg4[%c0_4, %c0_5] : memref<32x32xbf16, #tpu.memory_space<vmem>>, vector<32x32xbf16>
    %cst_6 = arith.constant dense<0.000000e+00> : vector<8x32xf32>
    %8 = tpu.matmul %3, %7, %cst_6 {dimension_numbers = #tpu.dot_dimension_numbers<[1], [0], [0], [1], [0, 0, 1, 1], [], []>} : vector<8x32xbf16>, vector<32x32xbf16>, vector<8x32xf32> -> vector<8x32xf32>
    %9 = arith.truncf %8 : vector<8x32xf32> to vector<8x32xbf16>
    %c0_7 = arith.constant 0 : index
    %c0_8 = arith.constant 0 : index
    %10 = vector.load %arg5[%c0_7, %c0_8] : memref<32x32xbf16, #tpu.memory_space<vmem>>, vector<32x32xbf16>
    %cst_9 = arith.constant dense<0.000000e+00> : vector<8x32xf32>
    %11 = tpu.matmul %3, %10, %cst_9 {dimension_numbers = #tpu.dot_dimension_numbers<[1], [0], [0], [1], [0, 0, 1, 1], [], []>} : vector<8x32xbf16>, vector<32x32xbf16>, vector<8x32xf32> -> vector<8x32xf32>
    %12 = arith.truncf %11 : vector<8x32xf32> to vector<8x32xbf16>
    %c8_i32 = arith.constant 8 : i32
    %13 = arith.muli %arg1, %c8_i32 : i32
    %14 = tpu.iota {dimensions = array<i32: 0>} : vector<8x8xi32>
    %15 = vector.broadcast %13 : i32 to vector<8x8xi32>
    %16 = arith.addi %14, %15 : vector<8x8xi32>
    %17 = tpu.iota {dimensions = array<i32: 1>} : vector<8x8xi32>
    %c0_i32 = arith.constant 0 : i32
    %18 = vector.broadcast %c0_i32 : i32 to vector<8x8xi32>
    %19 = arith.addi %16, %18 : vector<8x8xi32>
    %20 = arith.cmpi sle, %17, %19 : vector<8x8xi32>
    %21 = vector.extract_strided_slice %6 {offsets = [0, 0], sizes = [8, 8], strides = [1, 1]} : vector<8x32xbf16> to vector<8x8xbf16>
    %22 = vector.extract_strided_slice %9 {offsets = [0, 0], sizes = [8, 8], strides = [1, 1]} : vector<8x32xbf16> to vector<8x8xbf16>
    %23 = tpu.transpose %22, [1, 0] : vector<8x8xbf16> -> vector<8x8xbf16>
    %cst_10 = arith.constant dense<0.000000e+00> : vector<8x8xf32>
    %24 = tpu.matmul %21, %23, %cst_10 {dimension_numbers = #tpu.dot_dimension_numbers<[1], [0], [0], [1], [0, 0, 1, 1], [], []>} : vector<8x8xbf16>, vector<8x8xbf16>, vector<8x8xf32> -> vector<8x8xf32>
    %cst_11 = arith.constant -1.000000e+06 : f32
    %25 = vector.broadcast %cst_11 : f32 to vector<8x8xf32>
    %26 = arith.select %20, %24, %25 : vector<8x8xi1>, vector<8x8xf32>
    %cst_12 = arith.constant dense<0xFF800000> : vector<8xf32>
    %27 = vector.multi_reduction <maximumf>, %26, %cst_12 [1] : vector<8x8xf32> to vector<8xf32>
    %28 = vector.shape_cast %27 : vector<8xf32> to vector<8x1xf32>
    %29 = vector.broadcast %28 : vector<8x1xf32> to vector<8x8xf32>
    %30 = arith.subf %26, %29 : vector<8x8xf32>
    %31 = math.exp %30 : vector<8x8xf32>
    %cst_13 = arith.constant dense<0.000000e+00> : vector<8xf32>
    %32 = vector.multi_reduction <add>, %31, %cst_13 [1] : vector<8x8xf32> to vector<8xf32>
    %33 = vector.shape_cast %32 : vector<8xf32> to vector<8x1xf32>
    %34 = tpu.reciprocal %33 {approx = true} : vector<8x1xf32> -> vector<8x1xf32>
    %35 = vector.broadcast %34 : vector<8x1xf32> to vector<8x8xf32>
    %36 = arith.mulf %31, %35 : vector<8x8xf32>
    %37 = arith.truncf %36 : vector<8x8xf32> to vector<8x8xbf16>
    %38 = vector.extract_strided_slice %12 {offsets = [0, 0], sizes = [8, 8], strides = [1, 1]} : vector<8x32xbf16> to vector<8x8xbf16>
    %cst_14 = arith.constant dense<0.000000e+00> : vector<8x8xf32>
    %39 = tpu.matmul %37, %38, %cst_14 {dimension_numbers = #tpu.dot_dimension_numbers<[1], [0], [0], [1], [0, 0, 1, 1], [], []>} : vector<8x8xbf16>, vector<8x8xbf16>, vector<8x8xf32> -> vector<8x8xf32>
    %40 = arith.truncf %39 : vector<8x8xf32> to vector<8x8xbf16>
    %c0_15 = arith.constant 0 : index
    %c0_16 = arith.constant 0 : index
    %41 = vector.load %arg10[%c0_15, %c0_16] : memref<8x32xbf16, #tpu.memory_space<vmem>>, vector<8x8xbf16>
    tpu.vector_store %arg10[%c0_15, %c0_16], %40 {strides = array<i32>} : memref<8x32xbf16, #tpu.memory_space<vmem>>, vector<8x8xbf16>,
    %42 = vector.extract_strided_slice %6 {offsets = [0, 8], sizes = [8, 8], strides = [1, 1]} : vector<8x32xbf16> to vector<8x8xbf16>
    %43 = vector.extract_strided_slice %9 {offsets = [0, 8], sizes = [8, 8], strides = [1, 1]} : vector<8x32xbf16> to vector<8x8xbf16>
    %44 = tpu.transpose %43, [1, 0] : vector<8x8xbf16> -> vector<8x8xbf16>
    %cst_17 = arith.constant dense<0.000000e+00> : vector<8x8xf32>
    %45 = tpu.matmul %42, %44, %cst_17 {dimension_numbers = #tpu.dot_dimension_numbers<[1], [0], [0], [1], [0, 0, 1, 1], [], []>} : vector<8x8xbf16>, vector<8x8xbf16>, vector<8x8xf32> -> vector<8x8xf32>
    %cst_18 = arith.constant -1.000000e+06 : f32
    %46 = vector.broadcast %cst_18 : f32 to vector<8x8xf32>
    %47 = arith.select %20, %45, %46 : vector<8x8xi1>, vector<8x8xf32>
    %cst_19 = arith.constant dense<0xFF800000> : vector<8xf32>
    %48 = vector.multi_reduction <maximumf>, %47, %cst_19 [1] : vector<8x8xf32> to vector<8xf32>
    %49 = vector.shape_cast %48 : vector<8xf32> to vector<8x1xf32>
    %50 = vector.broadcast %49 : vector<8x1xf32> to vector<8x8xf32>
    %51 = arith.subf %47, %50 : vector<8x8xf32>
    %52 = math.exp %51 : vector<8x8xf32>
    %cst_20 = arith.constant dense<0.000000e+00> : vector<8xf32>
    %53 = vector.multi_reduction <add>, %52, %cst_20 [1] : vector<8x8xf32> to vector<8xf32>
    %54 = vector.shape_cast %53 : vector<8xf32> to vector<8x1xf32>
    %55 = tpu.reciprocal %54 {approx = true} : vector<8x1xf32> -> vector<8x1xf32>
    %56 = vector.broadcast %55 : vector<8x1xf32> to vector<8x8xf32>
    %57 = arith.mulf %52, %56 : vector<8x8xf32>
    %58 = arith.truncf %57 : vector<8x8xf32> to vector<8x8xbf16>
    %59 = vector.extract_strided_slice %12 {offsets = [0, 8], sizes = [8, 8], strides = [1, 1]} : vector<8x32xbf16> to vector<8x8xbf16>
    %cst_21 = arith.constant dense<0.000000e+00> : vector<8x8xf32>
    %60 = tpu.matmul %58, %59, %cst_21 {dimension_numbers = #tpu.dot_dimension_numbers<[1], [0], [0], [1], [0, 0, 1, 1], [], []>} : vector<8x8xbf16>, vector<8x8xbf16>, vector<8x8xf32> -> vector<8x8xf32>
    %61 = arith.truncf %60 : vector<8x8xf32> to vector<8x8xbf16>
    %c0_22 = arith.constant 0 : index
    %c8 = arith.constant 8 : index
    %62 = vector.load %arg10[%c0_22, %c8] : memref<8x32xbf16, #tpu.memory_space<vmem>>, vector<8x8xbf16>
    tpu.vector_store %arg10[%c0_22, %c8], %61 {strides = array<i32>} : memref<8x32xbf16, #tpu.memory_space<vmem>>, vector<8x8xbf16>,
    %63 = vector.extract_strided_slice %6 {offsets = [0, 16], sizes = [8, 8], strides = [1, 1]} : vector<8x32xbf16> to vector<8x8xbf16>
    %64 = vector.extract_strided_slice %9 {offsets = [0, 16], sizes = [8, 8], strides = [1, 1]} : vector<8x32xbf16> to vector<8x8xbf16>
    %65 = tpu.transpose %64, [1, 0] : vector<8x8xbf16> -> vector<8x8xbf16>
    %cst_23 = arith.constant dense<0.000000e+00> : vector<8x8xf32>
    %66 = tpu.matmul %63, %65, %cst_23 {dimension_numbers = #tpu.dot_dimension_numbers<[1], [0], [0], [1], [0, 0, 1, 1], [], []>} : vector<8x8xbf16>, vector<8x8xbf16>, vector<8x8xf32> -> vector<8x8xf32>
    %cst_24 = arith.constant -1.000000e+06 : f32
    %67 = vector.broadcast %cst_24 : f32 to vector<8x8xf32>
    %68 = arith.select %20, %66, %67 : vector<8x8xi1>, vector<8x8xf32>
    %cst_25 = arith.constant dense<0xFF800000> : vector<8xf32>
    %69 = vector.multi_reduction <maximumf>, %68, %cst_25 [1] : vector<8x8xf32> to vector<8xf32>
    %70 = vector.shape_cast %69 : vector<8xf32> to vector<8x1xf32>
    %71 = vector.broadcast %70 : vector<8x1xf32> to vector<8x8xf32>
    %72 = arith.subf %68, %71 : vector<8x8xf32>
    %73 = math.exp %72 : vector<8x8xf32>
    %cst_26 = arith.constant dense<0.000000e+00> : vector<8xf32>
    %74 = vector.multi_reduction <add>, %73, %cst_26 [1] : vector<8x8xf32> to vector<8xf32>
    %75 = vector.shape_cast %74 : vector<8xf32> to vector<8x1xf32>
    %76 = tpu.reciprocal %75 {approx = true} : vector<8x1xf32> -> vector<8x1xf32>
    %77 = vector.broadcast %76 : vector<8x1xf32> to vector<8x8xf32>
    %78 = arith.mulf %73, %77 : vector<8x8xf32>
    %79 = arith.truncf %78 : vector<8x8xf32> to vector<8x8xbf16>
    %80 = vector.extract_strided_slice %12 {offsets = [0, 16], sizes = [8, 8], strides = [1, 1]} : vector<8x32xbf16> to vector<8x8xbf16>
    %cst_27 = arith.constant dense<0.000000e+00> : vector<8x8xf32>
    %81 = tpu.matmul %79, %80, %cst_27 {dimension_numbers = #tpu.dot_dimension_numbers<[1], [0], [0], [1], [0, 0, 1, 1], [], []>} : vector<8x8xbf16>, vector<8x8xbf16>, vector<8x8xf32> -> vector<8x8xf32>
    %82 = arith.truncf %81 : vector<8x8xf32> to vector<8x8xbf16>
    %c0_28 = arith.constant 0 : index
    %c16 = arith.constant 16 : index
    %83 = vector.load %arg10[%c0_28, %c16] : memref<8x32xbf16, #tpu.memory_space<vmem>>, vector<8x8xbf16>
    tpu.vector_store %arg10[%c0_28, %c16], %82 {strides = array<i32>} : memref<8x32xbf16, #tpu.memory_space<vmem>>, vector<8x8xbf16>,
    %84 = vector.extract_strided_slice %6 {offsets = [0, 24], sizes = [8, 8], strides = [1, 1]} : vector<8x32xbf16> to vector<8x8xbf16>
    %85 = vector.extract_strided_slice %9 {offsets = [0, 24], sizes = [8, 8], strides = [1, 1]} : vector<8x32xbf16> to vector<8x8xbf16>
    %86 = tpu.transpose %85, [1, 0] : vector<8x8xbf16> -> vector<8x8xbf16>
    %cst_29 = arith.constant dense<0.000000e+00> : vector<8x8xf32>
    %87 = tpu.matmul %84, %86, %cst_29 {dimension_numbers = #tpu.dot_dimension_numbers<[1], [0], [0], [1], [0, 0, 1, 1], [], []>} : vector<8x8xbf16>, vector<8x8xbf16>, vector<8x8xf32> -> vector<8x8xf32>
    %cst_30 = arith.constant -1.000000e+06 : f32
    %88 = vector.broadcast %cst_30 : f32 to vector<8x8xf32>
    %89 = arith.select %20, %87, %88 : vector<8x8xi1>, vector<8x8xf32>
    %cst_31 = arith.constant dense<0xFF800000> : vector<8xf32>
    %90 = vector.multi_reduction <maximumf>, %89, %cst_31 [1] : vector<8x8xf32> to vector<8xf32>
    %91 = vector.shape_cast %90 : vector<8xf32> to vector<8x1xf32>
    %92 = vector.broadcast %91 : vector<8x1xf32> to vector<8x8xf32>
    %93 = arith.subf %89, %92 : vector<8x8xf32>
    %94 = math.exp %93 : vector<8x8xf32>
    %cst_32 = arith.constant dense<0.000000e+00> : vector<8xf32>
    %95 = vector.multi_reduction <add>, %94, %cst_32 [1] : vector<8x8xf32> to vector<8xf32>
    %96 = vector.shape_cast %95 : vector<8xf32> to vector<8x1xf32>
    %97 = tpu.reciprocal %96 {approx = true} : vector<8x1xf32> -> vector<8x1xf32>
    %98 = vector.broadcast %97 : vector<8x1xf32> to vector<8x8xf32>
    %99 = arith.mulf %94, %98 : vector<8x8xf32>
    %100 = arith.truncf %99 : vector<8x8xf32> to vector<8x8xbf16>
    %101 = vector.extract_strided_slice %12 {offsets = [0, 24], sizes = [8, 8], strides = [1, 1]} : vector<8x32xbf16> to vector<8x8xbf16>
    %cst_33 = arith.constant dense<0.000000e+00> : vector<8x8xf32>
    %102 = tpu.matmul %100, %101, %cst_33 {dimension_numbers = #tpu.dot_dimension_numbers<[1], [0], [0], [1], [0, 0, 1, 1], [], []>} : vector<8x8xbf16>, vector<8x8xbf16>, vector<8x8xf32> -> vector<8x8xf32>
    %103 = arith.truncf %102 : vector<8x8xf32> to vector<8x8xbf16>
    %c0_34 = arith.constant 0 : index
    %c24 = arith.constant 24 : index
    %104 = vector.load %arg10[%c0_34, %c24] : memref<8x32xbf16, #tpu.memory_space<vmem>>, vector<8x8xbf16>
    tpu.vector_store %arg10[%c0_34, %c24], %103 {strides = array<i32>} : memref<8x32xbf16, #tpu.memory_space<vmem>>, vector<8x8xbf16>,
    %c0_35 = arith.constant 0 : index
    %c0_36 = arith.constant 0 : index
    %105 = vector.load %arg10[%c0_35, %c0_36] : memref<8x32xbf16, #tpu.memory_space<vmem>>, vector<8x32xbf16>
    %c0_37 = arith.constant 0 : index
    %c0_38 = arith.constant 0 : index
    %106 = vector.load %arg6[%c0_37, %c0_38] : memref<32x32xbf16, #tpu.memory_space<vmem>>, vector<32x32xbf16>
    %cst_39 = arith.constant dense<0.000000e+00> : vector<8x32xf32>
    %107 = tpu.matmul %105, %106, %cst_39 {dimension_numbers = #tpu.dot_dimension_numbers<[1], [0], [0], [1], [0, 0, 1, 1], [], []>} : vector<8x32xbf16>, vector<32x32xbf16>, vector<8x32xf32> -> vector<8x32xf32>
    %108 = arith.addf %1, %107 : vector<8x32xf32>
    %cst_40 = arith.constant dense<0.000000e+00> : vector<8xf32>
    %109 = vector.multi_reduction <add>, %108, %cst_40 [1] : vector<8x32xf32> to vector<8xf32>
    %110 = vector.shape_cast %109 : vector<8xf32> to vector<8x1xf32>
    %cst_41 = arith.constant 3.200000e+01 : f32
    %111 = vector.broadcast %cst_41 : f32 to vector<8x1xf32>
    %112 = arith.divf %110, %111 : vector<8x1xf32>
    %113 = vector.broadcast %112 : vector<8x1xf32> to vector<8x32xf32>
    %114 = arith.subf %108, %113 : vector<8x32xf32>
    %115 = arith.mulf %114, %114 : vector<8x32xf32>
    %cst_42 = arith.constant dense<0.000000e+00> : vector<8xf32>
    %116 = vector.multi_reduction <add>, %115, %cst_42 [1] : vector<8x32xf32> to vector<8xf32>
    %117 = vector.shape_cast %116 : vector<8xf32> to vector<8x1xf32>
    %cst_43 = arith.constant 3.200000e+01 : f32
    %118 = vector.broadcast %cst_43 : f32 to vector<8x1xf32>
    %119 = arith.divf %117, %118 : vector<8x1xf32>
    %cst_44 = arith.constant 9.99999974E-6 : f32
    %120 = vector.broadcast %cst_44 : f32 to vector<8x1xf32>
    %121 = arith.addf %119, %120 : vector<8x1xf32>
    %122 = math.rsqrt %121 : vector<8x1xf32>
    %123 = vector.broadcast %122 : vector<8x1xf32> to vector<8x32xf32>
    %124 = arith.mulf %114, %123 : vector<8x32xf32>
    %c0_45 = arith.constant 0 : index
    %c0_46 = arith.constant 0 : index
    %125 = vector.load %arg7[%c0_45, %c0_46] : memref<1x32xf32, #tpu.memory_space<vmem>>, vector<1x32xf32>
    %126 = vector.broadcast %125 : vector<1x32xf32> to vector<8x32xf32>
    %127 = arith.mulf %124, %126 : vector<8x32xf32>
    %c0_47 = arith.constant 0 : index
    %c0_48 = arith.constant 0 : index
    %128 = vector.load %arg8[%c0_47, %c0_48] : memref<1x32xf32, #tpu.memory_space<vmem>>, vector<1x32xf32>
    %129 = vector.broadcast %128 : vector<1x32xf32> to vector<8x32xf32>
    %130 = arith.addf %127, %129 : vector<8x32xf32>
    %c0_49 = arith.constant 0 : index
    %c0_50 = arith.constant 0 : index
    %c0_51 = arith.constant 0 : index
    %131 = vector.load %arg9[%c0_49, %c0_50, %c0_51] : memref<1x8x32xf32, #tpu.memory_space<vmem>>, vector<1x8x32xf32>
    %132 = vector.shape_cast %131 : vector<1x8x32xf32> to vector<8x32xf32>
    %133 = vector.shape_cast %130 : vector<8x32xf32> to vector<1x8x32xf32>
    tpu.vector_store %arg9[%c0_49, %c0_50, %c0_51], %133 {strides = array<i32>} : memref<1x8x32xf32, #tpu.memory_space<vmem>>, vector<1x8x32xf32>,
    return
  }
  func.func @transform_0(%arg0: i32, %arg1: i32) -> (i32, i32, i32) {
    %c0_i32 = arith.constant 0 : i32
    %c0_i32_0 = arith.constant 0 : i32
    %c0_i32_1 = arith.constant 0 : i32
    return %arg0, %c0_i32, %c0_i32_0 : i32, i32, i32
  }
  func.func @transform_1(%arg0: i32, %arg1: i32) -> (i32, i32) {
    %c0_i32 = arith.constant 0 : i32
    %c0_i32_0 = arith.constant 0 : i32
    %c0_i32_1 = arith.constant 0 : i32
    return %c0_i32, %c0_i32_0 : i32, i32
  }
  func.func @transform_2(%arg0: i32, %arg1: i32) -> (i32, i32) {
    %c0_i32 = arith.constant 0 : i32
    %c0_i32_0 = arith.constant 0 : i32
    %c0_i32_1 = arith.constant 0 : i32
    return %c0_i32, %c0_i32_0 : i32, i32
  }
  func.func @transform_3(%arg0: i32, %arg1: i32) -> (i32, i32) {
    %c0_i32 = arith.constant 0 : i32
    %c0_i32_0 = arith.constant 0 : i32
    %c0_i32_1 = arith.constant 0 : i32
    return %c0_i32, %c0_i32_0 : i32, i32
  }
  func.func @transform_4(%arg0: i32, %arg1: i32) -> (i32, i32) {
    %c0_i32 = arith.constant 0 : i32
    %c0_i32_0 = arith.constant 0 : i32
    %c0_i32_1 = arith.constant 0 : i32
    return %c0_i32, %c0_i32_0 : i32, i32
  }
  func.func @transform_5(%arg0: i32, %arg1: i32) -> (i32, i32) {
    %c0_i32 = arith.constant 0 : i32
    %c0_i32_0 = arith.constant 0 : i32
    %c0_i32_1 = arith.constant 0 : i32
    return %c0_i32, %c0_i32_0 : i32, i32
  }
  func.func @transform_6(%arg0: i32, %arg1: i32) -> (i32, i32) {
    %c0_i32 = arith.constant 0 : i32
    %c0_i32_0 = arith.constant 0 : i32
    %c0_i32_1 = arith.constant 0 : i32
    return %c0_i32, %c0_i32_0 : i32, i32
  }
  func.func @transform_7(%arg0: i32, %arg1: i32) -> (i32, i32, i32) {
    %c0_i32 = arith.constant 0 : i32
    %c0_i32_0 = arith.constant 0 : i32
    return %arg0, %arg1, %c0_i32 : i32, i32, i32
  }
}

</mosaic_0001>

<bundles_post_ra>
// kernel: tpu_custom_call.1
= control target key start
LH: loop header
LB: loop body
LE: loop exit
PB: predicated region body
PF: predicated region fallthrough
CT: control target
= control target key end

     0   :  { %s2130_s0 = inlined_call_operand.hbm [shape: f32[2,8,32], index: 0, kind: input, shape index: {}]   ;;  %s2131_s1 = inlined_call_operand.hbm [shape: bf16[32,32], index: 1, kind: input, shape index: {}]   ;;  %s2132_s2 = inlined_call_operand.hbm [shape: bf16[32,32], index: 2, kind: input, shape index: {}]   ;;  %s2133_s3 = inlined_call_operand.hbm [shape: bf16[32,32], index: 3, kind: input, shape index: {}]   ;;  %s2134_s4 = inlined_call_operand.hbm [shape: bf16[32,32], index: 4, kind: input, shape index: {}]   ;;  %s2135_s5 = inlined_call_operand.vmem [shape: f32[1,32], index: 5, kind: input, shape index: {}]   ;;  %s2136_s6 = inlined_call_operand.vmem [shape: f32[1,32], index: 6, kind: input, shape index: {}]   ;;  %s2137_s7 = inlined_call_operand.hbm [shape: f32[2,8,32], index: 7, kind: output, shape index: {}]  }
   0x1   :  { %2138 = sst [smem:[#allocation17_spill]] %s2131_s1 }
   0x2   :  { %2139 = sst [smem:[#allocation18_spill]] %s2132_s2 }
   0x3   :  { %2140 = sst [smem:[#allocation19_spill]] %s2133_s3 }
   0x4   :  { %2141 = sst [smem:[#allocation20_spill]] %s2134_s4 }
   0x5   :  { %12 = vsyncpa [#allocation4], 0 }
   0x6   :  { %14 = vsyncpa [#allocation4 + $0x1], 0 }
   0x7   :  { %15 = vsyncpa [#allocation7], 0 }
   0x8   :  { %16 = vsyncpa [#allocation10], 0 }
   0x9   :  { %17 = vsyncpa [#allocation5], 0 }
   0xa   :  { %19 = vsyncpa [#allocation5 + $0x1], 0  ;;  %s1823_s24 = smov 0   ;;  %s1825_s25 = smov 0  }
   0xb   :  { %s1827_s26 = smov 0   ;;  %s1829_s27 = smov 0  }
   0xc   :  { %s1831_s28 = smov 0   ;;  %s1833_s29 = smov 0  }
   0xd LB: > { %s1249_s30 = sadd.s32 4294967295, %s1765_s29   ;;  %p1251_p0 = scmp.ge.s32.totalorder %s1765_s29, 1  ;;  %s1765_s29 = sphi %s1833_s29, %s25_s29   ;;  %s1761_s28 = sphi %s1831_s28, %s2160_s28   ;;  %s1757_s27 = sphi %s1829_s27, %s2159_s27   ;;  %s1753_s26 = sphi %s1827_s26, %s2158_s26   ;;  %s1749_s25 = sphi %s1825_s25, %s2157_s25   ;;  %s1745_s24 = sphi %s1823_s24, %s2156_s24  }
   0xe   : > { %p1857_p1 = scmp.eq.s32.totalorder %s1249_s30, 0  ;;  %p222_p2 = scmp.lt.s32.totalorder %s1765_s29, 3 }
   0xf   : > { %s1767_s10 = smov [#allocation6]   ;;  %s1768_s13 = smov [#allocation9]  }
  0x10   : > { %p1862_p3 = pnand %p1251_p0, %p222_p2  ;;  %s234_s11 = sshll.u32 %s1767_s10, 4  ;;  %s235_s11 = int_to_ptr.vmem [resolvable:$true] %s234_s11 }
  0x11   : > { %s260_s14 = sshll.u32 %s1768_s13, 4  ;;  %s1769_s15 = smov [#allocation8]   ;;  %s261_s14 = int_to_ptr.vmem [resolvable:$true] %s260_s14 }
  0x12   : > { %p1426_p4 = pneg %p1862_p3  ;;  %s247_s16 = sshll.u32 %s1769_s15, 4  ;;  %s248_s16 = int_to_ptr.vmem [resolvable:$true] %s247_s16 }
  0x13   : > { %s1556_s17 = scalar_lea.vmem %s235_s11, 256  ;;  %p1564_p11 = scmp.lt.s32.totalorder %s235_s11, %s235_s11 }
  0x14   : > { %p1871_p6 = pnand %p1426_p4, %p1857_p1  ;;  %p1557_p8 = scmp.ne.s32.totalorder %s235_s11, %s1556_s17 }
  0x15   : > { %p1565_p12 = scmp.lt.s32.totalorder %s1556_s17, %s1556_s17 }
  0x16   : > { %p1547_p7 = pneg %p1871_p6 }
  0x17   : > { %p1566_p13 = por %p1565_p12, %p1564_p11 }
  0x18   : > { %p1559_p9 = pnand %p1557_p8, %p1547_p7 }
  0x1a   : > { %p1560_p10 = pneg %p1559_p9 }
  0x1c   : > { %p1567_p0 = pnand %p1566_p13, %p1560_p10 }
  0x1e   : > { %1570 = shalt.err (!%p1567_p0)
}
  0x1f   : > { %s1770_s18 = smov 64   ;;  %s1771_s19 = smov 4  }
  0x20   : > { %s2145_s1 = sld [smem:[#allocation17_spill]]  ;;  %s1582_s22 = scalar_lea.vmem %s261_s14, 256 }
  0x21   : > { %p1583_p2 = scmp.ne.s32.totalorder %s261_s14, %s1582_s22  ;;  %p1590_p9 = scmp.lt.s32.totalorder %s261_s14, %s261_s14 }
  0x22   : > { %p1591_p10 = scmp.lt.s32.totalorder %s1582_s22, %s1582_s22 }
  0x23   : > { %p1585_p4 = pnand %p1583_p2, %p1547_p7 }
  0x24   : > { %p1592_p11 = por %p1591_p10, %p1590_p9 }
  0x25   : > { %p1586_p8 = pneg %p1585_p4 }
  0x26   : > { %1429 = dma.hbm_to_vmem [thread:$0]  (!%p1871_p6), %s2145_s1, 256, %s235_s11, [#allocation7], %s1770_s18, %s1770_s18, %s1771_s19  }
  0x27   : > { %p1593_p12 = pnand %p1592_p11, %p1586_p8 }
  0x29   : > { %1596 = shalt.err (!%p1593_p12)
}
  0x2a   : > { %s2146_s3 = sld [smem:[#allocation19_spill]]  ;;  %s1608_s11 = scalar_lea.vmem %s248_s16, 256 }
  0x2b   : > { %p1609_p13 = scmp.ne.s32.totalorder %s248_s16, %s1608_s11  ;;  %p1616_p4 = scmp.lt.s32.totalorder %s248_s16, %s248_s16 }
  0x2c   : > { %p1617_p8 = scmp.lt.s32.totalorder %s1608_s11, %s1608_s11 }
  0x2d   : > { %p1611_p0 = pnand %p1609_p13, %p1547_p7 }
  0x2e   : > { %p1618_p9 = por %p1617_p8, %p1616_p4 }
  0x2f   : > { %p1612_p2 = pneg %p1611_p0 }
  0x30   : > { %1435 = dma.hbm_to_vmem [thread:$0]  (!%p1871_p6), %s2146_s3, 256, %s261_s14, [#allocation10], %s1770_s18, %s1770_s18, %s1771_s19  }
  0x31   : > { %p1619_p10 = pnand %p1618_p9, %p1612_p2 }
  0x33   : > { %1622 = shalt.err (!%p1619_p10)
}
  0x34   : > { %s2147_s2 = sld [smem:[#allocation18_spill]]  ;;  %s1772_s14 = smov [#allocation11]  }
  0x35   : > { %s273_s17 = sshll.u32 %s1772_s14, 4  ;;  %s274_s17 = int_to_ptr.vmem [resolvable:$true] %s273_s17 }
  0x36   : > { %s1634_s20 = scalar_lea.vmem %s274_s17, 256  ;;  %p1642_p0 = scmp.lt.s32.totalorder %s274_s17, %s274_s17 }
  0x37   : > { %p1635_p11 = scmp.ne.s32.totalorder %s274_s17, %s1634_s20  ;;  %p1643_p2 = scmp.lt.s32.totalorder %s1634_s20, %s1634_s20 }
  0x39   : > { %p1637_p12 = pnand %p1635_p11, %p1547_p7  ;;  %p1644_p4 = por %p1643_p2, %p1642_p0 }
  0x3a   : > { %1432 = dma.hbm_to_vmem [thread:$0]  (!%p1871_p6), %s2147_s2, 256, %s248_s16, [#allocation7], %s1770_s18, %s1770_s18, %s1771_s19  }
  0x3b   : > { %p1638_p13 = pneg %p1637_p12 }
  0x3d   : > { %p1645_p8 = pnand %p1644_p4, %p1638_p13 }
  0x3f   : > { %1648 = shalt.err (!%p1645_p8)
}
  0x40   : > { %s2148_s4 = sld [smem:[#allocation20_spill]]  ;;  %s1250_s12 = sadd.s32 4294967294, %s1765_s29  }
  0x41   : > { %s37_s22 = sadd.s32 1, %s1761_s28  ;;  %s44_s23 = sadd.s32 1, %s1753_s26 }
  0x42   : > { %p39_p7 = scmp.ge.s32.totalorder %s37_s22, 2  ;;  %p51_p9 = scmp.ne.s32.totalorder %s1753_s26, %s1749_s25 }
  0x43   : > { %p52_p10 = scmp.eq.s32.totalorder %s1765_s29, 0  ;;  %p57_p12 = scmp.ne.s32.totalorder %s1749_s25, %s1745_s24 }
  0x44   : > { %s2162_s22 = smov (%p39_p7, %s37_s22), 0  ;;  %p215_p4 = scmp.eq.s32.totalorder %s1250_s12, 1 }
  0x45   : > { %p1929_p11 = por %p52_p10, %p51_p9  ;;  %p1941_p0 = por %p1857_p1, %p57_p12 }
  0x46   : > { %1438 = dma.hbm_to_vmem [thread:$0]  (!%p1871_p6), %s2148_s4, 256, %s274_s17, [#allocation10], %s1770_s18, %s1770_s18, %s1771_s19  }
  0x47   : > { %s41_s18 = ssub.s32 %s1761_s28, %s2162_s22  ;;  %p209_p6 = scmp.eq.s32.totalorder %s1249_s30, 1 }
  0x48   : > { %p42_p13 = scmp.eq.s32.totalorder %s41_s18, 0  ;;  %p1952_p8 = por %p215_p4, %p57_p12 }
  0x49   : > { %p1945_p2 = por %p209_p6, %p51_p9  ;;  %p1451_p7 = scmp.lt.s32.totalorder %s1765_s29, 2 }
  0x4a   : > { %s1950_s13 = scalar_select %p42_p13, %s1753_s26, %s44_s23  }
  0x4b   : > { %s2152_s15 = scalar_select %p1952_p8, 1, 0 }
  0x4c   : > { %s293_s14 = sand.u32 1, %s1753_s26   ;;  %s1258_s30 = sshll.u32 %s1761_s28, 7 }
  0x4d   : > { %s1257_s17 = sshll.u32 %s293_s14, 3  ;;  %s302_s21 = scalar_lea.hbm %s2130_s0, %s1258_s30 }
  0x4e   : > { %s297_s18 = scalar_lea.vmem [#allocation3], %s1257_s17  ;;  %p1964_p9 = pnand %p1451_p7, %p1929_p11 }
  0x4f   : > { %s304_s1 = sshll.u32 %s297_s18, 4  ;;  %s294_s12 = scalar_lea.sflag [#allocation4], %s293_s14  ;;  %s305_s1 = int_to_ptr.vmem [resolvable:$true] %s304_s1 }
  0x50   : > { %p1651_p10 = pneg %p1964_p9  ;;  %s1662_s23 = scalar_lea.vmem %s305_s1, 128 }
  0x51   : > { %p1663_p12 = scmp.ne.s32.totalorder %s305_s1, %s1662_s23  ;;  %s1773_s3 = smov [#allocation3]  }
  0x52   : > { %s1667_s4 = sshll.u32 %s1773_s3, 4  ;;  %s1668_s4 = int_to_ptr.vmem [resolvable:$false] %s1667_s4 }
  0x53   : > { %p1665_p6 = pnand %p1663_p12, %p1651_p10  ;;  %s1669_s30 = scalar_lea.vmem %s1668_s4, 256 }
  0x54   : > { %p1670_p4 = scmp.lt.s32.totalorder %s305_s1, %s1668_s4  ;;  %p1671_p5 = scmp.lt.s32.totalorder %s1669_s30, %s1662_s23 }
  0x55   : > { %p1666_p13 = pneg %p1665_p6 }
  0x56   : > { %p1672_p8 = por %p1671_p5, %p1670_p4 }
  0x58   : > { %p1673_p11 = pnand %p1672_p8, %p1666_p13 }
  0x5a   : > { %1676 = shalt.err (!%p1673_p11)
}
  0x5b   : > { %1442 = dma.hbm_to_vmem [thread:$0]  (!%p1964_p9), %s302_s21, 128, %s305_s1, %s294_s12  }
  0x5c   : > { %313 = sbr.rel (%p1862_p3) target bundleno = 1788 (0x6fc), region = 48  ;;  %s1975_s10 = sand.u32 (!%p1862_p3), 1, %s1749_s25  }
  0x5d   : > { %s1260_s3 = sshll.u32 (!%p1862_p3), %s1975_s10, 3  ;;  %s316_s14 = scalar_lea.sflag (!%p1862_p3), [#allocation4], %s1975_s10 }
  0x5e   : > { %s319_s4 = scalar_lea.vmem (!%p1862_p3), [#allocation3], %s1260_s3 }
  0x61   : > { %1728 = dma.done.wait (%p1941_p0), %s316_s14, 128  }
  0x62   : > { %1730 = vsyncadd (%p1941_p0), %s316_s14, 4294967168 }
  0x63   : > { %1732 = dma.done.wait (%p1857_p1), [#allocation7], 512  }
  0x64   : > { %1734 = vsyncadd (%p1857_p1), [#allocation7], 4294966784 }
  0x65   : > { %1736 = dma.done.wait (%p1857_p1), [#allocation10], 512  }
  0x66   : > { %1738 = vsyncadd (%p1857_p1), [#allocation10], 4294966784  ;;  %v1774_v0 = vmov 0.0   ;;  %vm1775_vm0 = vmmov 0   ;;  %v1519_v1 = vld [vmem:[#allocation8 + $0x8] sm:$0xff]   ;;  %v1520_v2 = vld [vmem:[#allocation6 + $0x8] sm:$0xff]   ;;  %v545_v29 = vlaneseq }
  0x67   : > { %1334 = vmatprep.subr.bf16.mxu1 %v1774_v0  ;;  %1326 = vmatprep.subr.bf16.mxu0 %v1774_v0  ;;  %v1521_v3 = vld [vmem:[#allocation8] sm:$0xff]   ;;  %v1522_v4 = vld [vmem:[#allocation6] sm:$0xff]   ;;  %vm385_vm1 = vcmask 261120   ;;  %vm552_vm2 = vcmask 64512   ;;  %s1776_s1 = smov 112   ;;  %s1777_s2 = smov 120  }
  0x68   : > { %1338 = vmatprep.mubr.msk.bf16.mxu1 %vm1775_vm0, %v1774_v0  ;;  %1330 = vmatprep.mubr.msk.bf16.mxu0 %vm1775_vm0, %v1774_v0  ;;  %v2001_v5 = vld [vmem:[%s319_s4] sm:$0xff]  ;;  %s1778_s8 = smov 104   ;;  %v1523_v18 = vld [vmem:[#allocation9 + $0x8] sm:$0xff]   ;;  %v1524_v19 = vld [vmem:[#allocation9] sm:$0xff]   ;;  %v546_v30 = vshrl.u32 %v545_v29, 7  ;;  %v550_v31 = vand.u32 127, %v545_v29 }
  0x69   : > { %1335 = vmatpush3.bf16.msra.mxu1 %v1519_v1  ;;  %1327 = vmatpush3.bf16.msra.mxu0 %v1520_v2  ;;  %v368_v6 = vpack.c.bf16 %v2001_v5, %v2001_v5  ;;  %vm615_vm4 = vcmask 1043456   ;;  %vm660_vm5 = vcmask 60416   ;;  %s1779_s9 = smov 8   ;;  %s1780_s19 = smov 16   ;;  %vm783_vm6 = vcmask 126016  }
  0x6a   : > { %1336 = vmatprep.subr.bf16.mxu1 %v1774_v0  ;;  %1328 = vmatprep.subr.bf16.mxu0 %v1774_v0  ;;  %vm551_vm3 = vcmp.le.s32.totalorder %v550_v31, %v546_v30  ;;  %s1781_s17 = smov 24   ;;  %vm903_vm7 = vcmask 191616   ;;  %vm1023_vm8 = vcmask 257216   ;;  %s1292_s12 = sshll.u32 %s1757_s27, 7 }
  0x6b   : > { %s365_s23 = scalar_lea.vmem [#allocation12], %s1260_s3 }
  0x6c   : > { %s1132_s30 = sshll.u32 %s365_s23, 4  ;;  %s1133_s30 = int_to_ptr.vmem [resolvable:$true] %s1132_s30 }
  0x6d   : > { %1337 = vmatpush3.bf16.msra.mxu1 %v1521_v3  ;;  %1329 = vmatpush3.bf16.msra.mxu0 %v1522_v4 }
  0x6e   : > { %1350 = vmatprep.subr.bf16.mxu1 %v1774_v0  ;;  %1342 = vmatprep.subr.bf16.mxu0 %v1774_v0 }
  0x70   : > { %1339 = vmatmul.mubr.msk.bf16.vlgmr.msra.gmra.mxu1 %vm385_vm1, %v368_v6  ;;  %1331 = vmatmul.mubr.msk.bf16.vlgmr.msra.gmra.mxu0 %vm385_vm1, %v368_v6 }
  0x71   : > { %1352 = vmatprep.mubr.msk.bf16.mxu1 %vm1775_vm0, %v1774_v0  ;;  %1346 = vmatprep.mubr.msk.bf16.mxu0 %vm1775_vm0, %v1774_v0 }
  0x72   : > { %1343 = vmatpush3.bf16.msra.mxu0 %v1523_v18 }
  0x73   : > { %1344 = vmatprep.subr.bf16.mxu0 %v1774_v0 }
  0x76   : > { %1345 = vmatpush3.bf16.msra.mxu0 %v1524_v19 }
  0x77   : > { %1356 = vmatprep.subr.bf16.mxu0 %v1774_v0 }
  0x79   : > { %1347 = vmatmul.mubr.msk.bf16.vlgmr.msra.gmra.mxu0 %vm385_vm1, %v368_v6 }
  0x7a   : > { %1358 = vmatprep.mubr.msk.bf16.mxu0 %vm1775_vm0, %v1774_v0 }
 0x130   : > { %v480_v7 = vpop.f32.mrf.mxu1  ;;  %v423_v9 = vpop.f32.mrf.mxu0 }
 0x131   : > { %v486_v8 = vpack.c.bf16 %v480_v7, %v480_v7  ;;  %v429_v11 = vpack.c.bf16 %v423_v9, %v423_v9 }
 0x132   : > { %v1340_v10 = vpop.f32.mrf.mxu1  ;;  %v1332_v12 = vpop.f32.mrf.mxu0 }
 0x133   : > { %787 = vrot.lane.b32.xlu1 %v486_v8, %s1776_s1  ;;  %666 = vrot.lane.b32.xlu0 %v486_v8, %s1777_s2  ;;  %v557_v13 = vsel %vm552_vm2, %v486_v8, 0 }
 0x134   : > { %v483_v14 = vpop.f32.mrf.mxu1  ;;  %1351 = vmatpush3.bf16.xpose.msra.mxu1 %v557_v13  ;;  %v426_v15 = vpop.f32.mrf.mxu0 }
 0x135   : > { %1362 = vmatprep.subr.bf16.mxu1 %v1774_v0 }
 0x136   : > { %v1341_v16 = vpop.f32.mrf.mxu1  ;;  %v1333_v17 = vpop.f32.mrf.mxu0 }
 0x137   : > { %785 = vrot.lane.b32.xlu1 %v429_v11, %s1776_s1  ;;  %663 = vrot.lane.b32.xlu0 %v429_v11, %s1777_s2 }
 0x139   : > { %v537_v38 = vpop.f32.mrf.mxu0 }
 0x13a   : > { %v543_v39 = vpack.c.bf16 %v537_v38, %v537_v38 }
 0x13b   : > { %905 = vrot.lane.b32.xlu1 %v429_v11, %s1778_s8  ;;  %907 = vrot.lane.b32.xlu0 %v486_v8, %s1778_s8  ;;  %v1348_v40 = vpop.f32.mrf.mxu0 }
 0x13c   : > { %1353 = vmatmul.mubr.msk.bf16.vlgmr.msra.gmra.mxu1 %vm552_vm2, %v429_v11  ;;  %v617_v41 = vsel %vm615_vm4, %v543_v39, 0 }
 0x13d   : > { %1364 = vmatprep.mubr.msk.bf16.mxu1 %vm1775_vm0, %v1774_v0  ;;  %v540_v42 = vpop.f32.mrf.mxu0  ;;  %1357 = vmatpush3.bf16.msra.mxu0 %v617_v41 }
 0x13e   : > { %1368 = vmatprep.subr.bf16.mxu0 %v1774_v0 }
 0x13f   : > { %v1349_v43 = vpop.f32.mrf.mxu0 }
 0x1a5   : > { %v667_v20 = vpop.permute.xlu0 %666  ;;  %v788_v22 = vpop.permute.xlu1 %787 }
 0x1a6   : > { %v672_v21 = vsel %vm552_vm2, %v667_v20, 0  ;;  %v793_v24 = vsel %vm552_vm2, %v788_v22, 0 }
 0x1a7   : > { %1363 = vmatpush3.bf16.xpose.msra.mxu1 %v672_v21 }
 0x1a8   : > { %1374 = vmatprep.subr.bf16.mxu1 %v1774_v0 }
 0x1a9   : > { %v664_v23 = vpop.permute.xlu0 %663  ;;  %v786_v26 = vpop.permute.xlu1 %785 }
 0x1ad   : > { %v908_v25 = vpop.permute.xlu0 %907  ;;  %v906_v28 = vpop.permute.xlu1 %905 }
 0x1ae   : > { %1365 = vmatmul.mubr.msk.bf16.vlgmr.msra.gmra.mxu1 %vm552_vm2, %v664_v23  ;;  %v913_v27 = vsel %vm552_vm2, %v908_v25, 0 }
 0x1af   : > { %1375 = vmatpush3.bf16.xpose.msra.mxu1 %v793_v24  ;;  %1376 = vmatprep.mubr.msk.bf16.mxu1 %vm1775_vm0, %v1774_v0 }
 0x1b0   : > { %1386 = vmatprep.subr.bf16.mxu1 %v1774_v0 }
 0x1b6   : > { %1377 = vmatmul.mubr.msk.bf16.vlgmr.msra.gmra.mxu1 %vm552_vm2, %v786_v26 }
 0x1b7   : > { %1387 = vmatpush3.bf16.xpose.msra.mxu1 %v913_v27  ;;  %1388 = vmatprep.mubr.msk.bf16.mxu1 %vm1775_vm0, %v1774_v0 }
 0x1b8   : > { %1398 = vmatprep.subr.bf16.mxu1 %v1774_v0 }
 0x1be   : > { %1389 = vmatmul.mubr.msk.bf16.vlgmr.msra.gmra.mxu1 %vm552_vm2, %v906_v28 }
 0x1bf   : > { %1402 = vmatprep.mubr.msk.bf16.mxu1 %vm1775_vm0, %v1774_v0 }
 0x1fc   : > { %v593_v32 = vpop.f32.mrf.mxu1 }
 0x1fd   : > { %v599_v33 = vsel %vm551_vm3, %v593_v32, -1000000.0 }
 0x1fe   : > { %v1354_v34 = vpop.f32.mrf.mxu1  ;;  %v600_v35 = vsel %vm552_vm2, %v599_v33, -inf }
 0x1ff   : > { %601 = vmax.xlane.f32.xlu0 %v600_v35 }
 0x200   : > { %v596_v36 = vpop.f32.mrf.mxu1 }
 0x202   : > { %v1355_v37 = vpop.f32.mrf.mxu1 }
 0x26e   : > { %v708_v44 = vpop.f32.mrf.mxu1 }
 0x26f   : > { %v714_v45 = vsel %vm551_vm3, %v708_v44, -1000000.0 }
 0x270   : > { %v1366_v46 = vpop.f32.mrf.mxu1  ;;  %v715_v47 = vsel %vm552_vm2, %v714_v45, -inf }
 0x271   : > { %716 = vmax.xlane.f32.xlu1 %v715_v47 }
 0x272   : > { %v711_v48 = vpop.f32.mrf.mxu1 }
 0x274   : > { %v1367_v49 = vpop.f32.mrf.mxu1 }
 0x276   : > { %v829_v50 = vpop.f32.mrf.mxu1 }
 0x277   : > { %v835_v51 = vsel %vm551_vm3, %v829_v50, -1000000.0 }
 0x278   : > { %v1378_v52 = vpop.f32.mrf.mxu1  ;;  %v836_v53 = vsel %vm552_vm2, %v835_v51, -inf }
 0x279   : > { %837 = vmax.xlane.f32.xlu0 %v836_v53  ;;  %v1525_v52 = vld [vmem:[#allocation11 + $0x8] sm:$0xff]  }
 0x27a   : > { %v832_v54 = vpop.f32.mrf.mxu1  ;;  %1399 = vmatpush3.bf16.msra.mxu1 %v1525_v52 }
 0x27b   : > { %v1526_v54 = vld [vmem:[#allocation11] sm:$0xff]   ;;  %1400 = vmatprep.subr.bf16.mxu1 %v1774_v0 }
 0x27c   : > { %v1379_v55 = vpop.f32.mrf.mxu1 }
 0x27e   : > { %v949_v56 = vpop.f32.mrf.mxu1  ;;  %1401 = vmatpush3.bf16.msra.mxu1 %v1526_v54 }
 0x27f   : > { %v955_v57 = vsel %vm551_vm3, %v949_v56, -1000000.0 }
 0x280   : > { %v1390_v58 = vpop.f32.mrf.mxu1  ;;  %v956_v59 = vsel %vm552_vm2, %v955_v57, -inf }
 0x281   : > { %957 = vmax.xlane.f32.xlu0 %v956_v59 }
 0x282   : > { %v952_v60 = vpop.f32.mrf.mxu1 }
 0x284   : > { %v1391_v61 = vpop.f32.mrf.mxu1 }
 0x288   : > { %v602_v62 = vpop.xlane.xlu0 %601 }
 0x289   : > { %v603_v63 = vsub.f32 %v599_v33, %v602_v62 }
 0x28b   : > { %v604_v1 = vmul.f32 1.442695, %v603_v63 }
 0x28d   : > { %1527 = vpow2.f32 %v604_v1 }
 0x29a   : > { %v1528_v2 = vpop.eup %1527 }
 0x29b   : > { %v606_v3 = vsel %vm552_vm2, %v1528_v2, 0.0 }
 0x29c   : > { %607 = vadd.xlane.f32.xlu1 %v606_v3 }
 0x2ad   : > { %728 = vrot.lane.b32.xlu1 %v543_v39, %s1777_s2  ;;  %s1118_s2 = scalar_lea.sflag [#allocation5], %s1975_s10 }
 0x2fa   : > { %v717_v4 = vpop.xlane.xlu1 %716 }
 0x2fb   : > { %v718_v6 = vsub.f32 %v714_v45, %v717_v4 }
 0x2fd   : > { %v719_v7 = vmul.f32 1.442695, %v718_v6 }
 0x2ff   : > { %1529 = vpow2.f32 %v719_v7 }
 0x302   : > { %v838_v8 = vpop.xlane.xlu0 %837 }
 0x303   : > { %v839_v9 = vsub.f32 %v835_v51, %v838_v8 }
 0x305   : > { %v840_v10 = vmul.f32 1.442695, %v839_v9 }
 0x307   : > { %1531 = vpow2.f32 %v840_v10 }
 0x30a   : > { %v958_v11 = vpop.xlane.xlu0 %957 }
 0x30b   : > { %v959_v12 = vsub.f32 %v955_v57, %v958_v11 }
 0x30c   : > { %v1530_v13 = vpop.eup %1529 }
 0x30d   : > { %v960_v14 = vmul.f32 1.442695, %v959_v12  ;;  %v721_v15 = vsel %vm552_vm2, %v1530_v13, 0.0 }
 0x30e   : > { %722 = vadd.xlane.f32.xlu0 %v721_v15 }
 0x30f   : > { %1533 = vpow2.f32 %v960_v14 }
 0x314   : > { %v1532_v16 = vpop.eup %1531 }
 0x315   : > { %v842_v17 = vsel %vm552_vm2, %v1532_v16, 0.0 }
 0x316   : > { %843 = vadd.xlane.f32.xlu1 %v842_v17 }
 0x31c   : > { %v1534_v18 = vpop.eup %1533 }
 0x31d   : > { %v962_v19 = vsel %vm552_vm2, %v1534_v18, 0.0 }
 0x31e   : > { %963 = vadd.xlane.f32.xlu0 %v962_v19  ;;  %v1289_v19 = vld [vmem:[%s2135_s5] ss:$0 sm:$0xff] }
 0x325   : > { %v608_v20 = vpop.xlane.xlu1 %607 }
 0x326   : > { %1535 = vrcp.f32 %v608_v20 }
 0x327   : > { %968 = vrot.lane.b32.xlu1 %v543_v39, %s1778_s8  ;;  %s1677_s8 = scalar_lea.vmem %s1133_s30, 128 }
 0x328   : > { %p1678_p1 = scmp.ne.s32.totalorder %s1133_s30, %s1677_s8 }
 0x329   : > { %v729_v22 = vpop.permute.xlu1 %728 }
 0x32a   : > { %v734_v25 = vsel %vm615_vm4, %v729_v22, 0  ;;  %p1679_p3 = pnand %p1678_p1, %p1945_p2 }
 0x32c   : > { %p1680_p5 = pneg %p1679_p3 }
 0x333   : > { %v1536_v21 = vpop.eup %1535 }
 0x334   : > { %848 = vrot.lane.b32.xlu0 %v543_v39, %s1776_s1  ;;  %v610_v23 = vmul.f32 %v1536_v21, %v1528_v2  ;;  %v1290_v21 = vld [vmem:[%s2136_s6] ss:$0 sm:$0xff]  ;;  %s1130_s1 = scalar_lea.hbm %s2137_s7, %s1292_s12 }
 0x336   : > { %v611_v24 = vpack.c.bf16 %v610_v23, %v610_v23 }
 0x338   : > { %1359 = vmatmul.mubr.msk.bf16.vlgmr.msra.gmra.mxu0 %vm552_vm2, %v611_v24 }
 0x339   : > { %1369 = vmatpush3.bf16.msra.mxu0 %v734_v25  ;;  %1370 = vmatprep.mubr.msk.bf16.mxu0 %vm1775_vm0, %v1774_v0 }
 0x33a   : > { %1380 = vmatprep.subr.bf16.mxu0 %v1774_v0 }
 0x397   : > { %v723_v26 = vpop.xlane.xlu0 %722 }
 0x398   : > { %1537 = vrcp.f32 %v723_v26 }
 0x39f   : > { %v844_v27 = vpop.xlane.xlu1 %843 }
 0x3a0   : > { %1539 = vrcp.f32 %v844_v27 }
 0x3a3   : > { %v969_v36 = vpop.permute.xlu1 %968 }
 0x3a4   : > { %v974_v38 = vsel %vm615_vm4, %v969_v36, 0 }
 0x3a5   : > { %v1538_v28 = vpop.eup %1537 }
 0x3a6   : > { %v725_v29 = vmul.f32 %v1538_v28, %v1530_v13 }
 0x3a7   : > { %v964_v30 = vpop.xlane.xlu0 %963 }
 0x3a8   : > { %1541 = vrcp.f32 %v964_v30  ;;  %v726_v31 = vpack.c.bf16 %v725_v29, %v725_v29 }
 0x3aa   : > { %1371 = vmatmul.mubr.msk.bf16.vlgmr.msra.gmra.mxu0 %vm552_vm2, %v726_v31 }
 0x3ab   : > { %v849_v32 = vpop.permute.xlu0 %848  ;;  %1382 = vmatprep.mubr.msk.bf16.mxu0 %vm1775_vm0, %v1774_v0 }
 0x3ac   : > { %v854_v33 = vsel %vm615_vm4, %v849_v32, 0 }
 0x3ad   : > { %v1540_v34 = vpop.eup %1539  ;;  %1381 = vmatpush3.bf16.msra.mxu0 %v854_v33 }
 0x3ae   : > { %1392 = vmatprep.subr.bf16.mxu0 %v1774_v0  ;;  %v846_v35 = vmul.f32 %v1540_v34, %v1532_v16 }
 0x3b0   : > { %v847_v37 = vpack.c.bf16 %v846_v35, %v846_v35 }
 0x3b2   : > { %1383 = vmatmul.mubr.msk.bf16.vlgmr.msra.gmra.mxu0 %vm552_vm2, %v847_v37 }
 0x3b3   : > { %1393 = vmatpush3.bf16.msra.mxu0 %v974_v38  ;;  %1394 = vmatprep.mubr.msk.bf16.mxu0 %vm1775_vm0, %v1774_v0 }
 0x3b5   : > { %v1542_v39 = vpop.eup %1541 }
 0x3b6   : > { %v966_v40 = vmul.f32 %v1542_v39, %v1534_v18 }
 0x3b8   : > { %v967_v41 = vpack.c.bf16 %v966_v40, %v966_v40 }
 0x3ba   : > { %1395 = vmatmul.mubr.msk.bf16.vlgmr.msra.gmra.mxu0 %vm552_vm2, %v967_v41 }
 0x3f8   : > { %v653_v42 = vpop.f32.mrf.mxu0 }
 0x3f9   : > { %v659_v43 = vpack.c.bf16 %v653_v42, %v653_v42 }
 0x3fa   : > { %v1360_v44 = vpop.f32.mrf.mxu0 }
 0x3fb   : > { %661 = vst.msk [vmem:[#allocation2] sm:$0xf] %vm660_vm5, %v659_v43 }
 0x3fc   : > { %v656_v45 = vpop.f32.mrf.mxu0 }
 0x3fe   : > { %v1361_v46 = vpop.f32.mrf.mxu0 }
 0x46a   : > { %v770_v47 = vpop.f32.mrf.mxu0 }
 0x46b   : > { %v1295_v48 = vpack.c.bf16 %v770_v47, %v770_v47 }
 0x46c   : > { %v1372_v49 = vpop.f32.mrf.mxu0 }
 0x46d   : > { %780 = vrot.lane.b32.xlu1 %v1295_v48, %s1779_s9  ;;  %s1782_s9 = smov [#allocation12]  }
 0x46e   : > { %v773_v50 = vpop.f32.mrf.mxu0  ;;  %s1681_s27 = sshll.u32 %s1782_s9, 4  ;;  %s1682_s27 = int_to_ptr.vmem [resolvable:$false] %s1681_s27 }
 0x46f   : > { %s1683_s3 = scalar_lea.vmem %s1682_s27, 256  ;;  %p1684_p0 = scmp.lt.s32.totalorder %s1133_s30, %s1682_s27 }
 0x470   : > { %v1373_v51 = vpop.f32.mrf.mxu0  ;;  %p1685_p8 = scmp.lt.s32.totalorder %s1683_s3, %s1677_s8 }
 0x472   : > { %v890_v53 = vpop.f32.mrf.mxu0  ;;  %p1686_p7 = por %p1685_p8, %p1684_p0 }
 0x473   : > { %v1296_v55 = vpack.c.bf16 %v890_v53, %v890_v53 }
 0x474   : > { %v1384_v56 = vpop.f32.mrf.mxu0  ;;  %p1687_p9 = pnand %p1686_p7, %p1680_p5 }
 0x475   : > { %900 = vrot.lane.b32.xlu0 %v1296_v55, %s1780_s19 }
 0x476   : > { %v893_v57 = vpop.f32.mrf.mxu0 }
 0x478   : > { %v1385_v58 = vpop.f32.mrf.mxu0 }
 0x47a   : > { %v1010_v59 = vpop.f32.mrf.mxu0 }
 0x47b   : > { %v1297_v60 = vpack.c.bf16 %v1010_v59, %v1010_v59 }
 0x47c   : > { %v1396_v61 = vpop.f32.mrf.mxu0 }
 0x47d   : > { %1020 = vrot.lane.b32.xlu1 %v1297_v60, %s1781_s17 }
 0x47e   : > { %v1013_v62 = vpop.f32.mrf.mxu0 }
 0x480   : > { %v1397_v63 = vpop.f32.mrf.mxu0 }
 0x4df   : > { %v781_v1 = vpop.permute.xlu1 %780 }
 0x4e0   : > { %784 = vst.msk [vmem:[#allocation2] sm:$0xf] %vm783_vm6, %v781_v1 }
 0x4e7   : > { %v901_v2 = vpop.permute.xlu0 %900 }
 0x4e8   : > { %904 = vst.msk [vmem:[#allocation2] sm:$0xf] %vm903_vm7, %v901_v2 }
 0x4ef   : > { %v1021_v0 = vpop.permute.xlu1 %1020 }
 0x4f0   : > { %1024 = vst.msk [vmem:[#allocation2] sm:$0xf] %vm1023_vm8, %v1021_v0 }
 0x4f7   : > { %v1025_v3 = vld [vmem:[#allocation2] sm:$0xf] }
 0x4f8   : > { %1403 = vmatmul.mubr.msk.bf16.vlgmr.msra.gmra.mxu1 %vm385_vm1, %v1025_v3 }
 0x5b8   : > { %v1079_v4 = vpop.f32.mrf.mxu1 }
 0x5b9   : > { %v1085_v6 = vadd.f32 %v1079_v4, %v2001_v5 }
 0x5ba   : > { %v1404_v7 = vpop.f32.mrf.mxu1 }
 0x5bb   : > { %v1086_v8 = vsel %vm385_vm1, %v1085_v6, 0.0 }
 0x5bc   : > { %1087 = vadd.xlane.f32.xlu0 %v1086_v8  ;;  %v1082_v9 = vpop.f32.mrf.mxu1 }
 0x5be   : > { %v1405_v10 = vpop.f32.mrf.mxu1 }
 0x645   : > { %v1088_v11 = vpop.xlane.xlu0 %1087 }
 0x646   : > { %v1090_v12 = vmul.f32 0.03125, %v1088_v11 }
 0x648   : > { %v1091_v13 = vsub.f32 %v1085_v6, %v1090_v12 }
 0x64a   : > { %v1092_v14 = vmul.f32 %v1091_v13, %v1091_v13 }
 0x64c   : > { %v1093_v15 = vsel %vm385_vm1, %v1092_v14, 0.0 }
 0x64d   : > { %1094 = vadd.xlane.f32.xlu1 %v1093_v15 }
 0x6d6   : > { %v1095_v16 = vpop.xlane.xlu1 %1094 }
 0x6d7   : > { %v1096_v17 = vmul.f32 0.03125, %v1095_v16 }
 0x6d9   : > { %v1097_v18 = vadd.f32 1e-05, %v1096_v17 }
 0x6db   : > { %1543 = vrsqrt.f32 %v1097_v18 }
 0x6e8   : > { %v1544_v5 = vpop.eup %1543 }
 0x6e9   : > { %v1099_v20 = vmul.f32 %v1544_v5, %v1091_v13 }
 0x6eb   : > { %v1107_v22 = vmul.f32 %v1289_v19, %v1099_v20 }
 0x6ed   : > { %v1115_v23 = vadd.f32 %v1290_v21, %v1107_v22 }
 0x6ef   : > { %1116 = vst.msk [vmem:[%s365_s23] sm:$0xff] %vm385_vm1, %v1115_v23 }
 0x6f0   : > { %1690 = shalt.err (!%p1687_p9)
}
 0x6f1   : > { %s1691_s19 = scalar_lea.hbm %s1130_s1, 128  ;;  %s1695_s20 = scalar_lea.hbm %s2137_s7, 256 }
 0x6f2   : > { %p1692_p10 = scmp.ne.s32.totalorder %s1130_s1, %s1691_s19  ;;  %p1696_p13 = scmp.lt.s32.totalorder %s1130_s1, %s2137_s7 }
 0x6f3   : > { %p1697_p4 = scmp.lt.s32.totalorder %s1695_s20, %s1691_s19 }
 0x6f4   : > { %p1693_p12 = pnand %p1692_p10, %p1945_p2 }
 0x6f5   : > { %p1698_p11 = por %p1697_p4, %p1696_p13 }
 0x6f6   : > { %p1694_p6 = pneg %p1693_p12 }
 0x6f8   : > { %p1699_p1 = pnand %p1698_p11, %p1694_p6 }
 0x6fa   : > { %1702 = shalt.err (!%p1699_p1)
}
 0x6fb   : > { %1424 = dma.vmem_to_hbm [thread:$0]  (%p1945_p2), %s1133_s30, 128, %s1130_s1, %s1118_s2  }
 0x6fc PF: > { %s1144_s18 = sand.u32 1, %s1745_s24   ;;  %p2154_p3 = scmp.ne.s32.totalorder %s2152_s15, 0 }
 0x6fd   : > { %p2155_p5 = scmp.ge.s32.totalorder %s1765_s29, 2  ;;  %s1145_s12 = scalar_lea.sflag [#allocation5], %s1144_s18 }
 0x6ff   : > { %p1444_p0 = pnand %p2155_p5, %p2154_p3 }
 0x701   : > { %p1445_p8 = pneg %p1444_p0 }
 0x703   : > { %1740 = dma.done.wait (%p1445_p8), %s1145_s12, 128  }
 0x704   : > { %1742 = vsyncadd (%p1445_p8), %s1145_s12, 4294967168  ;;  %s25_s29 = sadd.s32 1, %s1765_s29   ;;  %s2156_s24 = smov %s1749_s25 }
 0x705   : > { %p22_p7 = scmp.ge.s32.totalorder %s25_s29, 4   ;;  %s2157_s25 = smov %s1753_s26 }
 0x706   : > { %s2158_s26 = smov %s1950_s13  ;;  %s2159_s27 = smov %s1761_s28 }
 0x707   : > { %s2160_s28 = smov %s2162_s22  ;;  %24 = sbr.rel (!%p22_p7) target bundleno = 13 (0xd), region = 109 }
 0x70c   :  { %1150 = vsyncpa [#allocation4], 1 }
 0x70d   :  { %1152 = vsyncpa [#allocation4 + $0x1], 1 }
 0x70e   :  { %1153 = vsyncpa [#allocation7], 1 }
 0x70f   :  { %1154 = vsyncpa [#allocation10], 1 }
 0x710   :  { %1155 = vsyncpa [#allocation5], 1 }
 0x711   :  { %1157 = vsyncpa [#allocation5 + $0x1], 1 }

</bundles_post_ra>
